<compile_context>
chip_gen: v7x
topology: tpu7x:2x2x1
jax: 0.10.0
libtpu: 0.0.40
codegen_flags: <defaults>
</compile_context>

<pallas_src>
from functools import partial

import jax
import jax.numpy as jnp
from jax import lax
from jax.experimental import pallas as pl
from jax.experimental.pallas import tpu as pltpu


def _round_up(x, m):
    return (x + m - 1) // m * m


def _cdiv(a, b):
    return -(-a // b)


def _resident_spec(shape):
    """BlockSpec for an operand that stays resident in VMEM across the grid."""
    zeros = (0,) * len(shape)
    index_map = lambda b, s: zeros
    try:
        # Constant index_map -> the second pipeline buffer is dead weight.
        return pl.BlockSpec(shape, index_map, pipeline_mode=pl.Buffered(1))
    except (TypeError, ValueError, AttributeError):
        return pl.BlockSpec(shape, index_map)


def _proj_kernel(x_ref, w_ref, b_ref, o_ref):
    # x_ref: (1, K, ts)      w_ref: (E, K)
    # b_ref: (E, 1) f32      o_ref: (1, E, ts) f32
    acc = jnp.dot(w_ref[...], x_ref[0], preferred_element_type=jnp.float32)  # (E, ts)
    o_ref[0] = (acc + b_ref[...]).astype(o_ref.dtype)


def point_reducer_proj(xp, w_mat, bias, *, ts_max=8192, vmem_cap_bytes=48 * 1024 * 1024):
    """xp: [B, K, S], w_mat: [E, K], bias: [E]  ->  [B, E, S] float32."""
    B, K, S = xp.shape
    E = w_mat.shape[0]
    in_bytes = jnp.dtype(xp.dtype).itemsize
    w_bytes = E * K * in_bytes + E * 4

    # --- tile policy: balanced spatial tiles, lane-aligned, VMEM-capped ------
    budget = max(vmem_cap_bytes - 2 * w_bytes - (2 << 20), 2 << 20)
    per_col = 2 * (K * in_bytes + E * 4)            # double-buffered bytes / column
    ts_cap = max(128, (budget // per_col) // 128 * 128)
    ts_lim = max(128, min(ts_max, ts_cap))

    nt = max(1, _cdiv(S, ts_lim))
    if B == 1 and nt == 1 and S >= 256:
        nt = 2                                       # keep the grid >= 2 (v7x: 2 TCs)
    if nt == 1:
        ts = S                                       # full-dim block: no 128 constraint
    else:
        ts = _round_up(_cdiv(S, nt), 128)            # lane-dense, unmasked stores
    S_pad = nt * ts

    if S_pad != S:
        xp = jnp.pad(xp, ((0, 0), (0, 0), (0, S_pad - S)))
    b_col = bias.astype(jnp.float32).reshape(E, 1)

    x_tile = K * ts * in_bytes
    o_tile = E * ts * 4
    vmem_limit = int(2 * (x_tile + o_tile) + 2 * w_bytes + (4 << 20))
    vmem_limit = min(max(vmem_limit, 16 << 20), vmem_cap_bytes)

    cost = pl.CostEstimate(
        flops=2 * B * S_pad * K * E,
        transcendentals=0,
        bytes_accessed=B * K * S_pad * in_bytes + w_bytes + B * E * S_pad * 4,
    )

    out = pl.pallas_call(
        _proj_kernel,
        out_shape=jax.ShapeDtypeStruct((B, E, S_pad), jnp.float32),
        grid_spec=pltpu.PrefetchScalarGridSpec(
            num_scalar_prefetch=0,
            grid=(B, nt),
            in_specs=[
                pl.BlockSpec((1, K, ts), lambda b, s: (b, 0, s)),
                _resident_spec((E, K)),              # weight resident in VMEM
                _resident_spec((E, 1)),              # bias resident in VMEM
            ],
            out_specs=pl.BlockSpec((1, E, ts), lambda b, s: (b, 0, s)),
        ),
        compiler_params=pltpu.CompilerParams(
            dimension_semantics=("parallel", "parallel"),
            vmem_limit_bytes=vmem_limit,
        ),
        cost_estimate=cost,
    )(xp, w_mat, b_col)

    if S_pad != S:
        out = out[:, :, :S]
    return out


@partial(jax.jit, static_argnames=("patch_size", "use_bf16"))
def point_reducer_forward(x, weight, bias, patch_size, use_bf16=True):
    """PointRecuder.forward.

    x:      [B, C, H, W, D]
    weight: [E, C, p, p, p]   (Conv3d weight, kernel_size == stride, padding=0)
    bias:   [E]
    returns [B, E, H//p, W//p, D//p]  float32
    """
    p = patch_size
    B, C, H, W, D = x.shape
    E = weight.shape[0]
    Ho, Wo, Do = H // p, W // p, D // p
    S = Ho * Wo * Do
    K = C * p * p * p
    cdt = jnp.bfloat16 if use_bf16 else jnp.float32

    # Conv3d with stride == kernel_size and padding=0 silently drops trailing
    # rows/cols/slices when the spatial dims are not divisible by p.
    x = x[:, :, :Ho * p, :Wo * p, :Do * p]

    # Patch repack -> [B, K, S]; K ordered (c, ph, pw, pd) to match the conv
    # weight flatten, S ordered (ho, wo, do). Under jit the pad + dtype cast in
    # point_reducer_proj fuse with this transpose: one pass over X.
    xp = x.reshape(B, C, Ho, p, Wo, p, Do, p)
    xp = xp.transpose(0, 1, 3, 5, 7, 2, 4, 6)        # [B, C, p, p, p, Ho, Wo, Do]
    xp = xp.reshape(B, K, S).astype(cdt)

    w_mat = weight.reshape(E, K).astype(cdt)         # [E, K]

    out = point_reducer_proj(xp, w_mat, bias)        # [B, E, S] f32
    return out.reshape(B, E, Ho, Wo, Do)             # free row-major reshape


if __name__ == "__main__":
    # Small shapes consistent with the module (in_chans=5 default).
    B, C, H, W, D = 2, 5, 8, 8, 8
    patch_size = 4
    embed_dim = 32

    key = jax.random.PRNGKey(0)
    kx, kw, kb = jax.random.split(key, 3)
    x = jax.random.normal(kx, (B, C, H, W, D), dtype=jnp.float32)
    weight = jax.random.normal(
        kw, (embed_dim, C, patch_size, patch_size, patch_size), dtype=jnp.float32
    ) * 0.05
    bias = jax.random.normal(kb, (embed_dim,), dtype=jnp.float32) * 0.05

    out = point_reducer_forward(x, weight, bias, patch_size=patch_size)
    out = jax.block_until_ready(out)

    assert out.shape == (B, embed_dim, H // patch_size, W // patch_size, D // patch_size)

    # Reference 1: same bf16 input rounding, f32 accumulation -> tight check.
    x_bf = x.astype(jnp.bfloat16).astype(jnp.float32)
    w_bf = weight.astype(jnp.bfloat16).astype(jnp.float32)
    ref_bf = lax.conv_general_dilated(
        x_bf, w_bf,
        window_strides=(patch_size, patch_size, patch_size),
        padding="VALID",
        dimension_numbers=("NCHWD", "OIHWD", "NCHWD"),
    ) + bias.reshape(1, embed_dim, 1, 1, 1)
    assert jnp.allclose(out, ref_bf, atol=2e-3, rtol=2e-3), "mismatch vs bf16-rounded ref"

    # Reference 2: full-f32 Conv3d (module semantics) -> loose check; only the
    # bf16 rounding of the matmul operands differs.
    ref_f32 = lax.conv_general_dilated(
        x, weight,
        window_strides=(patch_size, patch_size, patch_size),
        padding="VALID",
        dimension_numbers=("NCHWD", "OIHWD", "NCHWD"),
    ) + bias.reshape(1, embed_dim, 1, 1, 1)
    assert jnp.allclose(out, ref_f32, atol=5e-2, rtol=5e-2), "mismatch vs f32 Conv3d ref"

    print("KERNEL_OK")
</pallas_src>

<mosaic_0001>
module attributes {stable_mosaic.version = 11 : i64} {
  func.func @_proj_kernel(%arg0: i32, %arg1: i32, %arg2: memref<1x320x8xbf16, #tpu.memory_space<vmem>>, %arg3: memref<32x320xbf16, #tpu.memory_space<vmem>>, %arg4: memref<32x1xf32, #tpu.memory_space<vmem>>, %arg5: memref<1x32x8xf32, #tpu.memory_space<vmem>>) attributes {dimension_semantics = [#tpu.dimension_semantics<parallel>, #tpu.dimension_semantics<parallel>], iteration_bounds = array<i64: 2, 1>, scalar_prefetch = 0 : i64, scratch_operands = 0 : i64, tpu.core_type = #tpu.core_type<tc>, window_params = [{transform_indices = @transform_0, window_bounds = array<i64: 1, 320, 8>}, {pipeline_mode = #tpu.pipeline_mode<synchronous>, transform_indices = @transform_1, window_bounds = array<i64: 32, 320>}, {pipeline_mode = #tpu.pipeline_mode<synchronous>, transform_indices = @transform_2, window_bounds = array<i64: 32, 1>}, {transform_indices = @transform_3, window_bounds = array<i64: 1, 32, 8>}]} {
    %c0 = arith.constant 0 : index
    %c0_0 = arith.constant 0 : index
    %0 = vector.load %arg3[%c0, %c0_0] : memref<32x320xbf16, #tpu.memory_space<vmem>>, vector<32x320xbf16>
    %c0_1 = arith.constant 0 : index
    %c0_2 = arith.constant 0 : index
    %c0_3 = arith.constant 0 : index
    %1 = vector.load %arg2[%c0_1, %c0_2, %c0_3] : memref<1x320x8xbf16, #tpu.memory_space<vmem>>, vector<1x320x8xbf16>
    %2 = vector.shape_cast %1 : vector<1x320x8xbf16> to vector<320x8xbf16>
    %cst = arith.constant dense<0.000000e+00> : vector<32x8xf32>
    %3 = tpu.matmul %0, %2, %cst {dimension_numbers = #tpu.dot_dimension_numbers<[1], [0], [0], [1], [0, 0, 1, 1], [], []>} : vector<32x320xbf16>, vector<320x8xbf16>, vector<32x8xf32> -> vector<32x8xf32>
    %c0_4 = arith.constant 0 : index
    %c0_5 = arith.constant 0 : index
    %4 = vector.load %arg4[%c0_4, %c0_5] : memref<32x1xf32, #tpu.memory_space<vmem>>, vector<32x1xf32>
    %5 = vector.broadcast %4 : vector<32x1xf32> to vector<32x8xf32>
    %6 = arith.addf %3, %5 : vector<32x8xf32>
    %c0_6 = arith.constant 0 : index
    %c0_7 = arith.constant 0 : index
    %c0_8 = arith.constant 0 : index
    %7 = vector.load %arg5[%c0_6, %c0_7, %c0_8] : memref<1x32x8xf32, #tpu.memory_space<vmem>>, vector<1x32x8xf32>
    %8 = vector.shape_cast %7 : vector<1x32x8xf32> to vector<32x8xf32>
    %9 = vector.shape_cast %6 : vector<32x8xf32> to vector<1x32x8xf32>
    tpu.vector_store %arg5[%c0_6, %c0_7, %c0_8], %9 {strides = array<i32>} : memref<1x32x8xf32, #tpu.memory_space<vmem>>, vector<1x32x8xf32>,
    return
  }
  func.func @transform_0(%arg0: i32, %arg1: i32) -> (i32, i32, i32) {
    %c0_i32 = arith.constant 0 : i32
    %c0_i32_0 = arith.constant 0 : i32
    return %arg0, %c0_i32, %arg1 : i32, i32, i32
  }
  func.func @transform_1(%arg0: i32, %arg1: i32) -> (i32, i32) {
    %c0_i32 = arith.constant 0 : i32
    %c0_i32_0 = arith.constant 0 : i32
    %c0_i32_1 = arith.constant 0 : i32
    return %c0_i32, %c0_i32_0 : i32, i32
  }
  func.func @transform_2(%arg0: i32, %arg1: i32) -> (i32, i32) {
    %c0_i32 = arith.constant 0 : i32
    %c0_i32_0 = arith.constant 0 : i32
    %c0_i32_1 = arith.constant 0 : i32
    return %c0_i32, %c0_i32_0 : i32, i32
  }
  func.func @transform_3(%arg0: i32, %arg1: i32) -> (i32, i32, i32) {
    %c0_i32 = arith.constant 0 : i32
    %c0_i32_0 = arith.constant 0 : i32
    return %arg0, %c0_i32, %arg1 : i32, i32, i32
  }
}

</mosaic_0001>

<bundles_post_ra>
// kernel: point_reducer_forward.1
= control target key start
LH: loop header
LB: loop body
LE: loop exit
PB: predicated region body
PF: predicated region fallthrough
CT: control target
= control target key end

     0   :  { %s804_s12 = smov 0   ;;  %s806_s13 = smov 0   ;;  %s899_s0 = inlined_call_operand.vmem [shape: bf16[2,320,8], index: 0, kind: input, shape index: {}]   ;;  %s900_s1 = inlined_call_operand.vmem [shape: bf16[32,320], index: 1, kind: input, shape index: {}]   ;;  %s901_s2 = inlined_call_operand.vmem [shape: f32[32,1], index: 2, kind: input, shape index: {}]   ;;  %s902_s3 = inlined_call_operand.vmem [shape: f32[2,32,8], index: 3, kind: output, shape index: {}]  }
   0x1   :  { %s808_s14 = smov 0  }
   0x2 LB: > { %s25_s15 = sadd.s32 1, %s777_s13  ;;  %p622_p0 = scmp.ge.s32.totalorder %s781_s14, 1  ;;  %s781_s14 = sphi %s808_s14, %s13_s14   ;;  %s777_s13 = sphi %s806_s13, %s904_s13   ;;  %s773_s12 = sphi %s804_s12, %s903_s12  }
   0x3   : > { %p27_p1 = scmp.ge.s32.totalorder %s25_s15, 2  ;;  %p156_p2 = scmp.lt.s32.totalorder %s781_s14, 3 }
   0x5   : > { %s906_s15 = smov (%p27_p1, %s25_s15), 0  ;;  %p157_p3 = pnand %p622_p0, %p156_p2 }
   0x6   : > { %p186_p4 = scmp.lt.s32.totalorder (!%p157_p3), %s773_s12, 1  ;;  %vm425_vm0 = vcmask (!%p157_p3), 523264   ;;  %v752_v0 = vld [vmem:[%s900_s1 + $0x4] ss:$12 sps:$4 sm:$0xff] (!%p157_p3)   ;;  %v754_v1 = vld [vmem:[%s900_s1 + $0x8] ss:$12 sps:$4 sm:$0xff] (!%p157_p3)  }
   0x7   : > { %160 = sbr.rel (%p157_p3) target bundleno = 281 (0x119), region = 32  ;;  %464 = vmatprep.mubr.bf16.mxu0 (!%p157_p3), %v752_v0  ;;  %699 = vmatprep.mubr.msk.bf16.mxu1 (!%p157_p3), %vm425_vm0, %v754_v1  ;;  %v783_v2 = vmov (!%p157_p3), 0   ;;  %v251_v3 = vld [vmem:[%s901_s2] sm:$0xff] (!%p157_p3)  ;;  %v253_v4 = vld [vmem:[%s901_s2 + $0x10] sm:$0xff] (!%p157_p3)  ;;  %v252_v5 = vld [vmem:[%s901_s2 + $0x8] sm:$0xff] (!%p157_p3)  ;;  %vm530_vm1 = vcmask (!%p157_p3), 64512  }
   0x8   : > { %729 = vset.pattern.permute.xlu0 (!%p157_p3), %v783_v2  ;;  %730 = vset.pattern.permute.xlu1 (!%p157_p3), %v783_v2  ;;  %v254_v6 = vld [vmem:[%s901_s2 + $0x18] sm:$0xff] (!%p157_p3)  ;;  %v755_v26 = vld [vmem:[%s900_s1 + $0x20] ss:$12 sps:$4 sm:$0xff] (!%p157_p3)  }
   0x9   : > { %257 = vperm.xlu0 (!%p157_p3), %729, %v251_v3   ;;  %267 = vperm.xlu1 (!%p157_p3), %730, %v253_v4   ;;  %v750_v28 = vld [vmem:[%s900_s1] ss:$12 sps:$4 sm:$0xff] (!%p157_p3)   ;;  %v756_v29 = vld [vmem:[%s900_s1 + $0x1c] ss:$12 sps:$4 sm:$0xff] (!%p157_p3)   ;;  %v758_v30 = vld [vmem:[%s900_s1 + $0x18] ss:$12 sps:$4 sm:$0xff] (!%p157_p3)  }
   0xd   : > { %262 = vperm.xlu0 (!%p157_p3), %729, %v252_v5   ;;  %272 = vperm.xlu1 (!%p157_p3), %730, %v254_v6  }
   0xe   : > { %s908_s12 = smov (!%p186_p4, %s773_s12), 1 }
   0xf   : > { %s703_s20 = smul.u32 160, %s908_s12  ;;  %s656_s17 = sshll.u32 %s908_s12, 5 }
  0x11   : > { %s841_s27 = scalar_lea.vmem %s899_s0, %s703_s20  ;;  %s201_s20 = scalar_lea.vmem %s902_s3, %s656_s17 }
  0x12   : > { %v731_v7 = vld [vmem:[%s841_s27 + $0x40] sm:$0xff]   ;;  %v733_v9 = vld [vmem:[%s841_s27 + $0x48] sm:$0xff]   ;;  %v735_v11 = vld [vmem:[%s841_s27 + $0x50] sm:$0xff]  }
  0x13   : > { %v732_v8 = vld [vmem:[%s841_s27] sm:$0xff]   ;;  %657 = vmatprep.subr.bf16.mxu0 %v731_v7  ;;  %v734_v10 = vld [vmem:[%s841_s27 + $0x8] sm:$0xff]   ;;  %v736_v12 = vld [vmem:[%s841_s27 + $0x10] sm:$0xff]  }
  0x14   : > { %658 = vmatpush3.bf16.msra.mxu0 %v732_v8  ;;  %v737_v13 = vld [vmem:[%s841_s27 + $0x58] sm:$0xff]   ;;  %v742_v15 = vld [vmem:[%s841_s27 + $0x80] sm:$0xff]   ;;  %v745_v17 = vld [vmem:[%s841_s27 + $0x88] sm:$0xff]  }
  0x15   : > { %659 = vmatprep.subr.bf16.mxu0 %v733_v9  ;;  %v738_v14 = vld [vmem:[%s841_s27 + $0x18] sm:$0xff]   ;;  %v739_v16 = vld [vmem:[%s841_s27 + $0x60] sm:$0xff]   ;;  %691 = vmatprep.subr.bf16.mxu1 %v742_v15  ;;  %v741_v19 = vld [vmem:[%s841_s27 + $0x68] sm:$0xff]  }
  0x16   : > { %692 = vmatpush3.bf16.msra.mxu1 %v742_v15  ;;  %v740_v18 = vld [vmem:[%s841_s27 + $0x20] sm:$0xff]   ;;  %v748_v20 = vld [vmem:[%s841_s27 + $0x90] sm:$0xff]   ;;  %v743_v21 = vld [vmem:[%s841_s27 + $0x28] sm:$0xff]  }
  0x17   : > { %693 = vmatprep.subr.bf16.mxu1 %v745_v17  ;;  %v753_v22 = vld [vmem:[%s841_s27 + $0x98] sm:$0xff]   ;;  %v744_v23 = vld [vmem:[%s841_s27 + $0x70] sm:$0xff]  }
  0x18   : > { %660 = vmatpush3.bf16.msra.mxu0 %v734_v10  ;;  %v746_v24 = vld [vmem:[%s841_s27 + $0x30] sm:$0xff]   ;;  %v747_v25 = vld [vmem:[%s841_s27 + $0x78] sm:$0xff]  }
  0x19   : > { %661 = vmatprep.subr.bf16.mxu0 %v735_v11  ;;  %v749_v27 = vld [vmem:[%s841_s27 + $0x38] sm:$0xff]  }
  0x1a   : > { %694 = vmatpush3.bf16.msra.mxu1 %v745_v17 }
  0x1b   : > { %695 = vmatprep.subr.bf16.mxu1 %v748_v20 }
  0x1c   : > { %662 = vmatpush3.bf16.msra.mxu0 %v736_v12 }
  0x1d   : > { %663 = vmatprep.subr.bf16.mxu0 %v737_v13 }
  0x1e   : > { %696 = vmatpush3.bf16.msra.mxu1 %v748_v20 }
  0x1f   : > { %697 = vmatprep.subr.bf16.mxu1 %v753_v22 }
  0x20   : > { %664 = vmatpush3.bf16.msra.mxu0 %v738_v14 }
  0x21   : > { %665 = vmatprep.subr.bf16.mxu0 %v739_v16 }
  0x22   : > { %698 = vmatpush3.bf16.msra.mxu1 %v753_v22 }
  0x24   : > { %666 = vmatpush3.bf16.msra.mxu0 %v740_v18 }
  0x25   : > { %667 = vmatprep.subr.bf16.mxu0 %v741_v19  ;;  %700 = vmatmul.mubr.msk.bf16.vlgmr.msra.gmra.mrb[0].mxu1 %vm425_vm0, %v755_v26 }
  0x28   : > { %668 = vmatpush3.bf16.msra.mxu0 %v743_v21 }
  0x29   : > { %669 = vmatprep.subr.bf16.mxu0 %v744_v23 }
  0x2c   : > { %670 = vmatpush3.bf16.msra.mxu0 %v746_v24 }
  0x2d   : > { %671 = vmatprep.subr.bf16.mxu0 %v747_v25 }
  0x30   : > { %672 = vmatpush3.bf16.msra.mxu0 %v749_v27 }
  0x33   : > { %465 = vmatmul.mubr.bf16.vlgmr.msra.gmra.mrb[0].mxu0 %v750_v28 }
  0x34   : > { %472 = vmatprep.mubr.bf16.mxu0 %v756_v29 }
  0x3b   : > { %473 = vmatmul.mubr.bf16.gmra.mrb[4].mxu0 %v758_v30 }
  0x88   : > { %v258_v33 = vpop.permute.xlu0 %257  ;;  %v268_v46 = vpop.permute.xlu1 %267 }
  0x8c   : > { %v263_v41 = vpop.permute.xlu0 %262  ;;  %v273_v55 = vpop.permute.xlu1 %272 }
  0xf8   : > { %v701_v31 = vpop.f32.mrb[0].mxu1 }
  0xf9   : > { %v515_v32 = vpop.f32.mrb[1].mxu1 }
  0xfa   : > { %v702_v34 = vpop.f32.mrb[2].mxu1 }
  0xfb   : > { %v518_v35 = vpop.f32.mrb[3].mxu1 }
 0x106   : > { %v673_v36 = vpop.f32.mrb[0].mxu0 }
 0x107   : > { %v674_v37 = vpop.f32.mrb[1].mxu0 }
 0x108   : > { %v675_v38 = vadd.f32 %v674_v37, %v673_v36  ;;  %v676_v39 = vpop.f32.mrb[2].mxu0 }
 0x109   : > { %v677_v40 = vpop.f32.mrb[3].mxu0 }
 0x10a   : > { %v678_v42 = vadd.f32 %v677_v40, %v676_v39  ;;  %v467_v43 = vadd.f32 %v675_v38, %v258_v33 }
 0x10c   : > { %v470_v44 = vadd.f32 %v678_v42, %v263_v41  ;;  %v516_v45 = vadd.f32 %v515_v32, %v467_v43 }
 0x10e   : > { %531 = vst.msk [vmem:[%s201_s20] sm:$0xff] %vm530_vm1, %v516_v45  ;;  %v519_v47 = vadd.f32 %v518_v35, %v470_v44  ;;  %v679_v48 = vpop.f32.mrb[4].mxu0 }
 0x10f   : > { %v680_v49 = vpop.f32.mrb[5].mxu0 }
 0x110   : > { %532 = vst.msk [vmem:[%s201_s20 + $0x8] sm:$0xff] %vm530_vm1, %v519_v47  ;;  %v681_v50 = vadd.f32 %v680_v49, %v679_v48  ;;  %v682_v51 = vpop.f32.mrb[6].mxu0 }
 0x111   : > { %v683_v52 = vpop.f32.mrb[7].mxu0 }
 0x112   : > { %v475_v53 = vadd.f32 %v681_v50, %v268_v46  ;;  %v684_v54 = vadd.f32 %v683_v52, %v682_v51 }
 0x114   : > { %v524_v56 = vadd.f32 %v701_v31, %v475_v53  ;;  %v478_v57 = vadd.f32 %v684_v54, %v273_v55 }
 0x116   : > { %533 = vst.msk [vmem:[%s201_s20 + $0x10] sm:$0xff] %vm530_vm1, %v524_v56  ;;  %v527_v58 = vadd.f32 %v702_v34, %v478_v57 }
 0x118   : > { %534 = vst.msk [vmem:[%s201_s20 + $0x18] sm:$0xff] %vm530_vm1, %v527_v58 }
 0x119 PF: > { %s13_s14 = sadd.s32 1, %s781_s14   ;;  %s903_s12 = smov %s777_s13 }
 0x11a   : > { %p10_p5 = scmp.ge.s32.totalorder %s13_s14, 4   ;;  %s904_s13 = smov %s906_s15 }
 0x11c   :  { %12 = sbr.rel (!%p10_p5) target bundleno = 2 (0x2), region = 62 }

</bundles_post_ra>
